<compile_context>
chip_gen: v5e
topology: v5e:2x2
jax: 0.10.0
libtpu: 0.0.40
codegen_flags: <defaults>
</compile_context>

<pallas_src>
import functools

import numpy as np
import jax
import jax.numpy as jnp
from jax.experimental import pallas as pl
from jax.experimental.pallas import tpu as pltpu


# ----------------------------------------------------------------------------
# Parameter initialization (deterministic, mirrors 'tanh-randorth' init).
# ----------------------------------------------------------------------------
def rand_ortho(key, shape, irange):
    """JAX port of the DTP rand_ortho: orthogonalize a uniform random matrix."""
    A = irange * (2.0 * jax.random.uniform(key, shape, dtype=jnp.float32) - 1.0)
    U, _, Vh = jnp.linalg.svd(A, full_matrices=False)
    # torch.svd returns V (not V^T); torch code computes U @ (I @ V) == U @ Vh.T
    return U @ Vh.T


def init_params(key, n_inp, n_hid, n_out):
    k1, k2, k3, k4 = jax.random.split(key, 4)
    Wxh = rand_ortho(k1, (n_hid, n_inp), np.sqrt(6.0 / (n_inp + n_hid))).T  # (n_inp, n_hid)
    Whh = rand_ortho(k2, (n_hid, n_hid), np.sqrt(6.0 / (n_hid + n_hid)))    # (n_hid, n_hid)
    Why = rand_ortho(k3, (n_hid, n_out), np.sqrt(6.0 / (n_hid + n_out)))    # (n_hid, n_out)
    bh = jnp.zeros((n_hid,), jnp.float32)
    by = jnp.zeros((n_out,), jnp.float32)
    # Vhh / ch exist in the module but are unused by forward(); keep for parity.
    Vhh = rand_ortho(k4, (n_hid, n_hid), np.sqrt(6.0 / (n_hid + n_hid)))
    ch = jnp.zeros((n_hid,), jnp.float32)
    return dict(Wxh=Wxh, Whh=Whh, Why=Why, bh=bh, by=by, Vhh=Vhh, ch=ch)


def _round_up(x, m):
    return (x + m - 1) // m * m


def _vmem_tile_bytes(rows, cols, buffers=1, dtype_bytes=4):
    """VMEM footprint of a 2D f32 buffer, including lane/sublane padding."""
    return buffers * _round_up(rows, 8) * _round_up(cols, 128) * dtype_bytes


# ----------------------------------------------------------------------------
# Pallas kernel: chunked recurrence + fused final projection.
# ----------------------------------------------------------------------------
def _tptt_recurrent_kernel(x_ref, wxh_ref, whh_ref, bh_ref, why_ref, by_ref,
                           h_out_ref, logits_ref, h_carry,
                           *, T, Bp, last_row_off):
    """One time-chunk of the recurrence (+ output projection on the last chunk).

    x_ref      : (T*Bp, Ip)   flattened (time, batch) rows for this chunk
    wxh_ref    : (Ip, Hp)     resident, single-buffered
    whh_ref    : (Hp, Hp)     resident, single-buffered
    bh_ref     : (1, Hp)      resident, single-buffered
    why_ref    : (Hp, n_out)  resident, single-buffered
    by_ref     : (1, n_out)   resident, single-buffered
    h_out_ref  : (T*Bp, Hp)   hidden states for this chunk (lane-dense)
    logits_ref : (Bp, n_out)  written only on the last chunk
    h_carry    : (Bp, Hp)     hidden state carried across grid steps (VMEM)
    """
    c = pl.program_id(0)

    @pl.when(c == 0)
    def _():
        h_carry[...] = jnp.zeros_like(h_carry)  # h0 = zeros(batch, n_hid)

    # Hoisted input projection for the whole chunk: one tall MXU call, bias
    # folded in once.  Written straight into the output block; the step loop
    # below overwrites each Bp-row slice in place with tanh(...), so no
    # separate xproj scratch is needed.
    h_out_ref[...] = (
        jnp.dot(x_ref[...], wxh_ref[...], preferred_element_type=jnp.float32)
        + bh_ref[...])

    whh = whh_ref[...]  # hoist the weight load out of the serial loop
    # TODO(synk): if the bundle dump shows Mosaic re-pushing the Hp-wide Whh
    # RHS every timestep, drive the MXU explicitly (pltpu.matmul_push_rhs once
    # per chunk + matmul_acc_lhs/matmul_pop per step) to amortize the weight
    # push across T small-batch steps.

    def step(t, h_prev):
        off = pl.multiple_of(t * Bp, Bp)
        pre = (jnp.dot(h_prev, whh, preferred_element_type=jnp.float32)
               + h_out_ref[pl.ds(off, Bp), :])        # xproj rows, read once
        h_t = jnp.tanh(pre)
        h_out_ref[pl.ds(off, Bp), :] = h_t            # overwrite in place
        return h_t

    # Partial unroll keeps LLO visibility without vreg-spill blowup at large T.
    h_carry[...] = jax.lax.fori_loop(0, T, step, h_carry[...],
                                     unroll=min(T, 8))

    # Fused output projection: logits = h_{seq_len-1} @ Why + by.
    @pl.when(c == pl.num_programs(0) - 1)
    def _():
        h_last = h_out_ref[pl.ds(last_row_off, Bp), :]
        logits_ref[...] = (
            jnp.dot(h_last, why_ref[...], preferred_element_type=jnp.float32)
            + by_ref[...]).astype(logits_ref.dtype)


# ----------------------------------------------------------------------------
# Wrapper
# ----------------------------------------------------------------------------
@functools.partial(jax.jit, static_argnames=("time_chunk",))
def tptt_rnn_forward(x, params, *, time_chunk=32):
    """Forward pass: x [seq_len, batch, n_inp] ->
    (logits [batch, n_out], h [seq_len, batch, n_hid])."""
    seq_len, batch, n_inp = x.shape
    n_hid = params["Whh"].shape[0]
    n_out = params["Why"].shape[1]
    f32 = jnp.float32

    # Lane alignment for the hidden dim: 256 fills the v6e/v7x 2x256^2 MXU
    # tiles for large n_hid; keep 128 on v5e (4x128^2) and for small n_hid.
    lane = 128
    try:
        kind = jax.devices()[0].device_kind.lower()
        if n_hid >= 256 and not any(v in kind for v in ("v2", "v3", "v4", "v5")):
            lane = 256
    except Exception:
        pass

    Bp = _round_up(batch, 8)                       # sublane tile
    Hp = _round_up(n_hid, lane)                    # lane-dense h stores
    Ip = _round_up(n_inp, 128) if n_inp >= 128 else n_inp  # pad K only if large
    T = min(time_chunk, seq_len)                   # timesteps per grid step
    seq_pad = _round_up(seq_len, T)
    num_chunks = seq_pad // T
    last_row_off = ((seq_len - 1) % T) * Bp        # row of h_{seq_len-1} in last chunk

    x = x.astype(f32)

    # Zero-pad only when needed (padded hidden units stay exactly 0 through the
    # recurrence, so the math is exact).  Skip the extra HBM pass if aligned.
    if (seq_pad, Bp, Ip) != (seq_len, batch, n_inp):
        x_p = jnp.zeros((seq_pad, Bp, Ip), f32).at[:seq_len, :batch, :n_inp].set(x)
    else:
        x_p = x
    if (Ip, Hp) != (n_inp, n_hid):
        Wxh_p = jnp.zeros((Ip, Hp), f32).at[:n_inp, :n_hid].set(params["Wxh"])
    else:
        Wxh_p = params["Wxh"].astype(f32)
    if Hp != n_hid:
        Whh_p = jnp.zeros((Hp, Hp), f32).at[:n_hid, :n_hid].set(params["Whh"])
        bh_p = jnp.zeros((1, Hp), f32).at[0, :n_hid].set(params["bh"])
        Why_p = jnp.zeros((Hp, n_out), f32).at[:n_hid, :].set(params["Why"])
    else:
        Whh_p = params["Whh"].astype(f32)
        bh_p = params["bh"].reshape(1, n_hid).astype(f32)
        Why_p = params["Why"].astype(f32)
    by_p = params["by"].reshape(1, n_out).astype(f32)

    # Flatten (time, batch) -> rows so the kernel is purely 2D.
    x_flat = x_p.reshape(seq_pad * Bp, Ip)

    # Explicit VMEM budget: single-buffered residents + double-buffered chunk
    # I/O + scratch, with headroom.  Floor at the 32 MiB default scoped limit.
    resident = (_vmem_tile_bytes(Ip, Hp) + _vmem_tile_bytes(Hp, Hp)
                + _vmem_tile_bytes(1, Hp) + _vmem_tile_bytes(Hp, n_out)
                + _vmem_tile_bytes(1, n_out))
    chunk_io = (_vmem_tile_bytes(T * Bp, Ip, buffers=2)
                + _vmem_tile_bytes(T * Bp, Hp, buffers=2)
                + _vmem_tile_bytes(Bp, n_out, buffers=2))
    scratch = _vmem_tile_bytes(Bp, Hp)
    vmem_limit = min(max(int(1.25 * (resident + chunk_io + scratch)) + (4 << 20),
                         32 << 20),
                     128 << 20)

    kernel = functools.partial(_tptt_recurrent_kernel,
                               T=T, Bp=Bp, last_row_off=last_row_off)

    # TODO(synk): on v7x (2 TensorCores) and batch >= 16, add a leading
    # "parallel" batch-tile grid axis so both cores run the time loop on half
    # the batch; single-core generations gain nothing from it.
    h_flat, logits_p = pl.pallas_call(
        kernel,
        out_shape=(jax.ShapeDtypeStruct((seq_pad * Bp, Hp), f32),
                   jax.ShapeDtypeStruct((Bp, n_out), f32)),
        grid_spec=pltpu.PrefetchScalarGridSpec(
            num_scalar_prefetch=0,
            grid=(num_chunks,),
            in_specs=[
                # streamed x chunk (double-buffered by default)
                pl.BlockSpec((T * Bp, Ip), lambda c: (c, 0)),
                # invariant weights: single-buffered residents
                pl.BlockSpec((Ip, Hp), lambda c: (0, 0),
                             pipeline_mode=pl.Buffered(1)),
                pl.BlockSpec((Hp, Hp), lambda c: (0, 0),
                             pipeline_mode=pl.Buffered(1)),
                pl.BlockSpec((1, Hp), lambda c: (0, 0),
                             pipeline_mode=pl.Buffered(1)),
                pl.BlockSpec((Hp, n_out), lambda c: (0, 0),
                             pipeline_mode=pl.Buffered(1)),
                pl.BlockSpec((1, n_out), lambda c: (0, 0),
                             pipeline_mode=pl.Buffered(1)),
            ],
            out_specs=(
                pl.BlockSpec((T * Bp, Hp), lambda c: (c, 0)),   # h chunk
                pl.BlockSpec((Bp, n_out), lambda c: (0, 0)),    # logits (last)
            ),
            scratch_shapes=[
                pltpu.VMEM((Bp, Hp), f32),   # carried hidden state
            ],
        ),
        compiler_params=pltpu.CompilerParams(
            dimension_semantics=("arbitrary",),   # time recurrence is serial
            vmem_limit_bytes=vmem_limit,
        ),
    )(x_flat, Wxh_p, Whh_p, bh_p, Why_p, by_p)

    h_p = h_flat.reshape(seq_pad, Bp, Hp)
    h = (h_p if (seq_pad, Bp, Hp) == (seq_len, batch, n_hid)
         else h_p[:seq_len, :batch, :n_hid])
    logits = logits_p if Bp == batch else logits_p[:batch]
    return logits, h


# Pure-JAX reference for sanity checking.
def tptt_rnn_reference(x, params):
    def step(h_prev, x_t):
        h_t = jnp.tanh(h_prev @ params["Whh"] + x_t @ params["Wxh"] + params["bh"])
        return h_t, h_t

    batch = x.shape[1]
    h0 = jnp.zeros((batch, params["Whh"].shape[0]), jnp.float32)
    _, h = jax.lax.scan(step, h0, x)
    logits = h[-1] @ params["Why"] + params["by"]
    return logits, h


if __name__ == "__main__":
    seq_len, batch, n_inp, n_hid, n_out = 8, 2, 4, 32, 8

    key = jax.random.PRNGKey(0)
    k_param, k_x = jax.random.split(key)
    params = init_params(k_param, n_inp, n_hid, n_out)
    x = jax.random.normal(k_x, (seq_len, batch, n_inp), dtype=jnp.float32)

    logits, h = jax.block_until_ready(tptt_rnn_forward(x, params))

    ref_logits, ref_h = tptt_rnn_reference(x, params)
    np.testing.assert_allclose(np.asarray(logits), np.asarray(ref_logits),
                               rtol=1e-5, atol=1e-5)
    np.testing.assert_allclose(np.asarray(h), np.asarray(ref_h),
                               rtol=1e-5, atol=1e-5)

    assert logits.shape == (batch, n_out)
    assert h.shape == (seq_len, batch, n_hid)
    print("KERNEL_OK")
</pallas_src>

<mosaic_0001>
module attributes {stable_mosaic.version = 11 : i64} {
  func.func @_tptt_recurrent_kernel(%arg0: i32, %arg1: memref<64x4xf32, #tpu.memory_space<vmem>>, %arg2: memref<4x128xf32, #tpu.memory_space<vmem>>, %arg3: memref<128x128xf32, #tpu.memory_space<vmem>>, %arg4: memref<1x128xf32, #tpu.memory_space<vmem>>, %arg5: memref<128x8xf32, #tpu.memory_space<vmem>>, %arg6: memref<1x8xf32, #tpu.memory_space<vmem>>, %arg7: memref<64x128xf32, #tpu.memory_space<vmem>>, %arg8: memref<8x8xf32, #tpu.memory_space<vmem>>, %arg9: memref<8x128xf32, #tpu.memory_space<vmem>>) attributes {dimension_semantics = [#tpu.dimension_semantics<arbitrary>], iteration_bounds = array<i64: 1>, scalar_prefetch = 0 : i64, scratch_operands = 1 : i64, tpu.core_type = #tpu.core_type<tc>, window_params = [{transform_indices = @transform_0, window_bounds = array<i64: 64, 4>}, {pipeline_mode = #tpu.pipeline_mode<synchronous>, transform_indices = @transform_1, window_bounds = array<i64: 4, 128>}, {pipeline_mode = #tpu.pipeline_mode<synchronous>, transform_indices = @transform_2, window_bounds = array<i64: 128, 128>}, {pipeline_mode = #tpu.pipeline_mode<synchronous>, transform_indices = @transform_3, window_bounds = array<i64: 1, 128>}, {pipeline_mode = #tpu.pipeline_mode<synchronous>, transform_indices = @transform_4, window_bounds = array<i64: 128, 8>}, {pipeline_mode = #tpu.pipeline_mode<synchronous>, transform_indices = @transform_5, window_bounds = array<i64: 1, 8>}, {transform_indices = @transform_6, window_bounds = array<i64: 64, 128>}, {pipeline_mode = #tpu.pipeline_mode<synchronous>, transform_indices = @transform_7, window_bounds = array<i64: 8, 8>}]} {
    %c0_i32 = arith.constant 0 : i32
    %0 = arith.cmpi eq, %arg0, %c0_i32 : i32
    %1 = arith.extui %0 : i1 to i32
    %c0_i32_0 = arith.constant 0 : i32
    %2 = arith.cmpi ne, %1, %c0_i32_0 : i32
    scf.if %2 {
      %cst_49 = arith.constant 0.000000e+00 : f32
      %88 = vector.broadcast %cst_49 : f32 to vector<8x128xf32>
      %c0_50 = arith.constant 0 : index
      %c0_51 = arith.constant 0 : index
      %89 = vector.load %arg9[%c0_50, %c0_51] : memref<8x128xf32, #tpu.memory_space<vmem>>, vector<8x128xf32>
      tpu.vector_store %arg9[%c0_50, %c0_51], %88 {strides = array<i32>} : memref<8x128xf32, #tpu.memory_space<vmem>>, vector<8x128xf32>,
    } else {
    }
    %c0 = arith.constant 0 : index
    %c0_1 = arith.constant 0 : index
    %3 = vector.load %arg1[%c0, %c0_1] : memref<64x4xf32, #tpu.memory_space<vmem>>, vector<64x4xf32>
    %c0_2 = arith.constant 0 : index
    %c0_3 = arith.constant 0 : index
    %4 = vector.load %arg2[%c0_2, %c0_3] : memref<4x128xf32, #tpu.memory_space<vmem>>, vector<4x128xf32>
    %cst = arith.constant dense<0.000000e+00> : vector<64x128xf32>
    %5 = tpu.matmul %3, %4, %cst {dimension_numbers = #tpu.dot_dimension_numbers<[1], [0], [0], [1], [0, 0, 1, 1], [], []>} : vector<64x4xf32>, vector<4x128xf32>, vector<64x128xf32> -> vector<64x128xf32>
    %c0_4 = arith.constant 0 : index
    %c0_5 = arith.constant 0 : index
    %6 = vector.load %arg4[%c0_4, %c0_5] : memref<1x128xf32, #tpu.memory_space<vmem>>, vector<1x128xf32>
    %7 = vector.broadcast %6 : vector<1x128xf32> to vector<64x128xf32>
    %8 = arith.addf %5, %7 : vector<64x128xf32>
    %c0_6 = arith.constant 0 : index
    %c0_7 = arith.constant 0 : index
    %9 = vector.load %arg7[%c0_6, %c0_7] : memref<64x128xf32, #tpu.memory_space<vmem>>, vector<64x128xf32>
    tpu.vector_store %arg7[%c0_6, %c0_7], %8 {strides = array<i32>} : memref<64x128xf32, #tpu.memory_space<vmem>>, vector<64x128xf32>,
    %c0_8 = arith.constant 0 : index
    %c0_9 = arith.constant 0 : index
    %10 = vector.load %arg3[%c0_8, %c0_9] : memref<128x128xf32, #tpu.memory_space<vmem>>, vector<128x128xf32>
    %c0_10 = arith.constant 0 : index
    %c0_11 = arith.constant 0 : index
    %11 = vector.load %arg9[%c0_10, %c0_11] : memref<8x128xf32, #tpu.memory_space<vmem>>, vector<8x128xf32>
    %c0_i32_12 = arith.constant 0 : i32
    %c8_i32 = arith.constant 8 : i32
    %12 = arith.muli %c0_i32_12, %c8_i32 : i32
    %13 = tpu.assume_multiple %12, 8 : i32
    %cst_13 = arith.constant dense<0.000000e+00> : vector<8x128xf32>
    %14 = tpu.matmul %11, %10, %cst_13 {dimension_numbers = #tpu.dot_dimension_numbers<[1], [0], [0], [1], [0, 0, 1, 1], [], []>} : vector<8x128xf32>, vector<128x128xf32>, vector<8x128xf32> -> vector<8x128xf32>
    %15 = arith.index_cast %13 : i32 to index
    %c0_14 = arith.constant 0 : index
    %16 = vector.load %arg7[%15, %c0_14] : memref<64x128xf32, #tpu.memory_space<vmem>>, vector<8x128xf32>
    %17 = arith.addf %14, %16 : vector<8x128xf32>
    %18 = math.tanh %17 : vector<8x128xf32>
    %19 = arith.index_cast %13 : i32 to index
    %c0_15 = arith.constant 0 : index
    %20 = vector.load %arg7[%19, %c0_15] : memref<64x128xf32, #tpu.memory_space<vmem>>, vector<8x128xf32>
    tpu.vector_store %arg7[%19, %c0_15], %18 {strides = array<i32>} : memref<64x128xf32, #tpu.memory_space<vmem>>, vector<8x128xf32>,
    %c1_i32 = arith.constant 1 : i32
    %c8_i32_16 = arith.constant 8 : i32
    %21 = arith.muli %c1_i32, %c8_i32_16 : i32
    %22 = tpu.assume_multiple %21, 8 : i32
    %cst_17 = arith.constant dense<0.000000e+00> : vector<8x128xf32>
    %23 = tpu.matmul %18, %10, %cst_17 {dimension_numbers = #tpu.dot_dimension_numbers<[1], [0], [0], [1], [0, 0, 1, 1], [], []>} : vector<8x128xf32>, vector<128x128xf32>, vector<8x128xf32> -> vector<8x128xf32>
    %24 = arith.index_cast %22 : i32 to index
    %c0_18 = arith.constant 0 : index
    %25 = vector.load %arg7[%24, %c0_18] : memref<64x128xf32, #tpu.memory_space<vmem>>, vector<8x128xf32>
    %26 = arith.addf %23, %25 : vector<8x128xf32>
    %27 = math.tanh %26 : vector<8x128xf32>
    %28 = arith.index_cast %22 : i32 to index
    %c0_19 = arith.constant 0 : index
    %29 = vector.load %arg7[%28, %c0_19] : memref<64x128xf32, #tpu.memory_space<vmem>>, vector<8x128xf32>
    tpu.vector_store %arg7[%28, %c0_19], %27 {strides = array<i32>} : memref<64x128xf32, #tpu.memory_space<vmem>>, vector<8x128xf32>,
    %c2_i32 = arith.constant 2 : i32
    %c8_i32_20 = arith.constant 8 : i32
    %30 = arith.muli %c2_i32, %c8_i32_20 : i32
    %31 = tpu.assume_multiple %30, 8 : i32
    %cst_21 = arith.constant dense<0.000000e+00> : vector<8x128xf32>
    %32 = tpu.matmul %27, %10, %cst_21 {dimension_numbers = #tpu.dot_dimension_numbers<[1], [0], [0], [1], [0, 0, 1, 1], [], []>} : vector<8x128xf32>, vector<128x128xf32>, vector<8x128xf32> -> vector<8x128xf32>
    %33 = arith.index_cast %31 : i32 to index
    %c0_22 = arith.constant 0 : index
    %34 = vector.load %arg7[%33, %c0_22] : memref<64x128xf32, #tpu.memory_space<vmem>>, vector<8x128xf32>
    %35 = arith.addf %32, %34 : vector<8x128xf32>
    %36 = math.tanh %35 : vector<8x128xf32>
    %37 = arith.index_cast %31 : i32 to index
    %c0_23 = arith.constant 0 : index
    %38 = vector.load %arg7[%37, %c0_23] : memref<64x128xf32, #tpu.memory_space<vmem>>, vector<8x128xf32>
    tpu.vector_store %arg7[%37, %c0_23], %36 {strides = array<i32>} : memref<64x128xf32, #tpu.memory_space<vmem>>, vector<8x128xf32>,
    %c3_i32 = arith.constant 3 : i32
    %c8_i32_24 = arith.constant 8 : i32
    %39 = arith.muli %c3_i32, %c8_i32_24 : i32
    %40 = tpu.assume_multiple %39, 8 : i32
    %cst_25 = arith.constant dense<0.000000e+00> : vector<8x128xf32>
    %41 = tpu.matmul %36, %10, %cst_25 {dimension_numbers = #tpu.dot_dimension_numbers<[1], [0], [0], [1], [0, 0, 1, 1], [], []>} : vector<8x128xf32>, vector<128x128xf32>, vector<8x128xf32> -> vector<8x128xf32>
    %42 = arith.index_cast %40 : i32 to index
    %c0_26 = arith.constant 0 : index
    %43 = vector.load %arg7[%42, %c0_26] : memref<64x128xf32, #tpu.memory_space<vmem>>, vector<8x128xf32>
    %44 = arith.addf %41, %43 : vector<8x128xf32>
    %45 = math.tanh %44 : vector<8x128xf32>
    %46 = arith.index_cast %40 : i32 to index
    %c0_27 = arith.constant 0 : index
    %47 = vector.load %arg7[%46, %c0_27] : memref<64x128xf32, #tpu.memory_space<vmem>>, vector<8x128xf32>
    tpu.vector_store %arg7[%46, %c0_27], %45 {strides = array<i32>} : memref<64x128xf32, #tpu.memory_space<vmem>>, vector<8x128xf32>,
    %c4_i32 = arith.constant 4 : i32
    %c8_i32_28 = arith.constant 8 : i32
    %48 = arith.muli %c4_i32, %c8_i32_28 : i32
    %49 = tpu.assume_multiple %48, 8 : i32
    %cst_29 = arith.constant dense<0.000000e+00> : vector<8x128xf32>
    %50 = tpu.matmul %45, %10, %cst_29 {dimension_numbers = #tpu.dot_dimension_numbers<[1], [0], [0], [1], [0, 0, 1, 1], [], []>} : vector<8x128xf32>, vector<128x128xf32>, vector<8x128xf32> -> vector<8x128xf32>
    %51 = arith.index_cast %49 : i32 to index
    %c0_30 = arith.constant 0 : index
    %52 = vector.load %arg7[%51, %c0_30] : memref<64x128xf32, #tpu.memory_space<vmem>>, vector<8x128xf32>
    %53 = arith.addf %50, %52 : vector<8x128xf32>
    %54 = math.tanh %53 : vector<8x128xf32>
    %55 = arith.index_cast %49 : i32 to index
    %c0_31 = arith.constant 0 : index
    %56 = vector.load %arg7[%55, %c0_31] : memref<64x128xf32, #tpu.memory_space<vmem>>, vector<8x128xf32>
    tpu.vector_store %arg7[%55, %c0_31], %54 {strides = array<i32>} : memref<64x128xf32, #tpu.memory_space<vmem>>, vector<8x128xf32>,
    %c5_i32 = arith.constant 5 : i32
    %c8_i32_32 = arith.constant 8 : i32
    %57 = arith.muli %c5_i32, %c8_i32_32 : i32
    %58 = tpu.assume_multiple %57, 8 : i32
    %cst_33 = arith.constant dense<0.000000e+00> : vector<8x128xf32>
    %59 = tpu.matmul %54, %10, %cst_33 {dimension_numbers = #tpu.dot_dimension_numbers<[1], [0], [0], [1], [0, 0, 1, 1], [], []>} : vector<8x128xf32>, vector<128x128xf32>, vector<8x128xf32> -> vector<8x128xf32>
    %60 = arith.index_cast %58 : i32 to index
    %c0_34 = arith.constant 0 : index
    %61 = vector.load %arg7[%60, %c0_34] : memref<64x128xf32, #tpu.memory_space<vmem>>, vector<8x128xf32>
    %62 = arith.addf %59, %61 : vector<8x128xf32>
    %63 = math.tanh %62 : vector<8x128xf32>
    %64 = arith.index_cast %58 : i32 to index
    %c0_35 = arith.constant 0 : index
    %65 = vector.load %arg7[%64, %c0_35] : memref<64x128xf32, #tpu.memory_space<vmem>>, vector<8x128xf32>
    tpu.vector_store %arg7[%64, %c0_35], %63 {strides = array<i32>} : memref<64x128xf32, #tpu.memory_space<vmem>>, vector<8x128xf32>,
    %c6_i32 = arith.constant 6 : i32
    %c8_i32_36 = arith.constant 8 : i32
    %66 = arith.muli %c6_i32, %c8_i32_36 : i32
    %67 = tpu.assume_multiple %66, 8 : i32
    %cst_37 = arith.constant dense<0.000000e+00> : vector<8x128xf32>
    %68 = tpu.matmul %63, %10, %cst_37 {dimension_numbers = #tpu.dot_dimension_numbers<[1], [0], [0], [1], [0, 0, 1, 1], [], []>} : vector<8x128xf32>, vector<128x128xf32>, vector<8x128xf32> -> vector<8x128xf32>
    %69 = arith.index_cast %67 : i32 to index
    %c0_38 = arith.constant 0 : index
    %70 = vector.load %arg7[%69, %c0_38] : memref<64x128xf32, #tpu.memory_space<vmem>>, vector<8x128xf32>
    %71 = arith.addf %68, %70 : vector<8x128xf32>
    %72 = math.tanh %71 : vector<8x128xf32>
    %73 = arith.index_cast %67 : i32 to index
    %c0_39 = arith.constant 0 : index
    %74 = vector.load %arg7[%73, %c0_39] : memref<64x128xf32, #tpu.memory_space<vmem>>, vector<8x128xf32>
    tpu.vector_store %arg7[%73, %c0_39], %72 {strides = array<i32>} : memref<64x128xf32, #tpu.memory_space<vmem>>, vector<8x128xf32>,
    %c7_i32 = arith.constant 7 : i32
    %c8_i32_40 = arith.constant 8 : i32
    %75 = arith.muli %c7_i32, %c8_i32_40 : i32
    %76 = tpu.assume_multiple %75, 8 : i32
    %cst_41 = arith.constant dense<0.000000e+00> : vector<8x128xf32>
    %77 = tpu.matmul %72, %10, %cst_41 {dimension_numbers = #tpu.dot_dimension_numbers<[1], [0], [0], [1], [0, 0, 1, 1], [], []>} : vector<8x128xf32>, vector<128x128xf32>, vector<8x128xf32> -> vector<8x128xf32>
    %78 = arith.index_cast %76 : i32 to index
    %c0_42 = arith.constant 0 : index
    %79 = vector.load %arg7[%78, %c0_42] : memref<64x128xf32, #tpu.memory_space<vmem>>, vector<8x128xf32>
    %80 = arith.addf %77, %79 : vector<8x128xf32>
    %81 = math.tanh %80 : vector<8x128xf32>
    %82 = arith.index_cast %76 : i32 to index
    %c0_43 = arith.constant 0 : index
    %83 = vector.load %arg7[%82, %c0_43] : memref<64x128xf32, #tpu.memory_space<vmem>>, vector<8x128xf32>
    tpu.vector_store %arg7[%82, %c0_43], %81 {strides = array<i32>} : memref<64x128xf32, #tpu.memory_space<vmem>>, vector<8x128xf32>,
    %c8_i32_44 = arith.constant 8 : i32
    %c0_45 = arith.constant 0 : index
    %c0_46 = arith.constant 0 : index
    %84 = vector.load %arg9[%c0_45, %c0_46] : memref<8x128xf32, #tpu.memory_space<vmem>>, vector<8x128xf32>
    tpu.vector_store %arg9[%c0_45, %c0_46], %81 {strides = array<i32>} : memref<8x128xf32, #tpu.memory_space<vmem>>, vector<8x128xf32>,
    %c0_i32_47 = arith.constant 0 : i32
    %85 = arith.cmpi eq, %arg0, %c0_i32_47 : i32
    %86 = arith.extui %85 : i1 to i32
    %c0_i32_48 = arith.constant 0 : i32
    %87 = arith.cmpi ne, %86, %c0_i32_48 : i32
    scf.if %87 {
      %c56 = arith.constant 56 : index
      %c0_49 = arith.constant 0 : index
      %88 = vector.load %arg7[%c56, %c0_49] : memref<64x128xf32, #tpu.memory_space<vmem>>, vector<8x128xf32>
      %c0_50 = arith.constant 0 : index
      %c0_51 = arith.constant 0 : index
      %89 = vector.load %arg5[%c0_50, %c0_51] : memref<128x8xf32, #tpu.memory_space<vmem>>, vector<128x8xf32>
      %cst_52 = arith.constant dense<0.000000e+00> : vector<8x8xf32>
      %90 = tpu.matmul %88, %89, %cst_52 {dimension_numbers = #tpu.dot_dimension_numbers<[1], [0], [0], [1], [0, 0, 1, 1], [], []>} : vector<8x128xf32>, vector<128x8xf32>, vector<8x8xf32> -> vector<8x8xf32>
      %c0_53 = arith.constant 0 : index
      %c0_54 = arith.constant 0 : index
      %91 = vector.load %arg6[%c0_53, %c0_54] : memref<1x8xf32, #tpu.memory_space<vmem>>, vector<1x8xf32>
      %92 = vector.broadcast %91 : vector<1x8xf32> to vector<8x8xf32>
      %93 = arith.addf %90, %92 : vector<8x8xf32>
      %c0_55 = arith.constant 0 : index
      %c0_56 = arith.constant 0 : index
      %94 = vector.load %arg8[%c0_55, %c0_56] : memref<8x8xf32, #tpu.memory_space<vmem>>, vector<8x8xf32>
      tpu.vector_store %arg8[%c0_55, %c0_56], %93 {strides = array<i32>} : memref<8x8xf32, #tpu.memory_space<vmem>>, vector<8x8xf32>,
    } else {
    }
    return
  }
  func.func @transform_0(%arg0: i32) -> (i32, i32) {
    %c0_i32 = arith.constant 0 : i32
    %c0_i32_0 = arith.constant 0 : i32
    return %arg0, %c0_i32 : i32, i32
  }
  func.func @transform_1(%arg0: i32) -> (i32, i32) {
    %c0_i32 = arith.constant 0 : i32
    %c0_i32_0 = arith.constant 0 : i32
    %c0_i32_1 = arith.constant 0 : i32
    return %c0_i32, %c0_i32_0 : i32, i32
  }
  func.func @transform_2(%arg0: i32) -> (i32, i32) {
    %c0_i32 = arith.constant 0 : i32
    %c0_i32_0 = arith.constant 0 : i32
    %c0_i32_1 = arith.constant 0 : i32
    return %c0_i32, %c0_i32_0 : i32, i32
  }
  func.func @transform_3(%arg0: i32) -> (i32, i32) {
    %c0_i32 = arith.constant 0 : i32
    %c0_i32_0 = arith.constant 0 : i32
    %c0_i32_1 = arith.constant 0 : i32
    return %c0_i32, %c0_i32_0 : i32, i32
  }
  func.func @transform_4(%arg0: i32) -> (i32, i32) {
    %c0_i32 = arith.constant 0 : i32
    %c0_i32_0 = arith.constant 0 : i32
    %c0_i32_1 = arith.constant 0 : i32
    return %c0_i32, %c0_i32_0 : i32, i32
  }
  func.func @transform_5(%arg0: i32) -> (i32, i32) {
    %c0_i32 = arith.constant 0 : i32
    %c0_i32_0 = arith.constant 0 : i32
    %c0_i32_1 = arith.constant 0 : i32
    return %c0_i32, %c0_i32_0 : i32, i32
  }
  func.func @transform_6(%arg0: i32) -> (i32, i32) {
    %c0_i32 = arith.constant 0 : i32
    %c0_i32_0 = arith.constant 0 : i32
    return %arg0, %c0_i32 : i32, i32
  }
  func.func @transform_7(%arg0: i32) -> (i32, i32) {
    %c0_i32 = arith.constant 0 : i32
    %c0_i32_0 = arith.constant 0 : i32
    %c0_i32_1 = arith.constant 0 : i32
    return %c0_i32, %c0_i32_0 : i32, i32
  }
}

</mosaic_0001>

<bundles_post_ra>
// kernel: tptt_rnn_forward.1
= control target key start
LH: loop header
LB: loop body
LE: loop exit
PB: predicated region body
PF: predicated region fallthrough
CT: control target
= control target key end

     0   :  { %vm68_vm0 = vcmask 1043456   ;;  %vm43_vm1 = vcmask 31744   ;;  %v426_v18 = vmov 0.0   ;;  %vm374_vm2 = vcmask 64512   ;;  %s801_s2 = inlined_call_operand.vmem [shape: f32[128,128], index: 2, kind: input, shape index: {}]   ;;  %s802_s1 = inlined_call_operand.vmem [shape: f32[4,128], index: 1, kind: input, shape index: {}]   ;;  %s803_s0 = inlined_call_operand.vmem [shape: f32[64,4], index: 0, kind: input, shape index: {}]   ;;  %s804_s3 = inlined_call_operand.vmem [shape: f32[1,128], index: 3, kind: input, shape index: {}]   ;;  %s805_s6 = inlined_call_operand.vmem [shape: f32[64,128], index: 6, kind: output, shape index: {0}]   ;;  %s806_s4 = inlined_call_operand.vmem [shape: f32[128,8], index: 4, kind: input, shape index: {}]   ;;  %s807_s5 = inlined_call_operand.vmem [shape: f32[1,8], index: 5, kind: input, shape index: {}]   ;;  %s808_s7 = inlined_call_operand.vmem [shape: f32[8,8], index: 7, kind: output, shape index: {1}]  }
   0x1   :  { %v470_v0 = vld [vmem:[%s801_s2 + $0x78] sm:$0xff]  ;;  %v475_v1 = vld [vmem:[%s801_s2 + $0x70] sm:$0xff]  ;;  %v482_v2 = vld [vmem:[%s801_s2 + $0x68] sm:$0xff] }
   0x2   :  { %139 = vmatpush.msra.mxu1 %v470_v0  ;;  %163 = vmatpush.msra.mxu2 %v470_v0  ;;  %v38_v3 = vld [vmem:[%s802_s1] sm:$0xf]  ;;  %v504_v6 = vld [vmem:[%s801_s2 + $0x58] sm:$0xff]  ;;  %v513_v7 = vld [vmem:[%s801_s2 + $0x50] sm:$0xff] }
   0x3   :  { %187 = vmatpush.msra.mxu3 %v470_v0  ;;  %v493_v4 = vld [vmem:[%s801_s2 + $0x60] sm:$0xff]  ;;  %384 = vmatpush.msk.msra.mxu0 %vm68_vm0, %v38_v3  ;;  %v522_v8 = vld [vmem:[%s801_s2 + $0x48] sm:$0xff]  ;;  %v540_v10 = vld [vmem:[%s801_s2 + $0x38] sm:$0xff] }
   0x4   :  { %140 = vmatpush.msra.mxu1 %v475_v1  ;;  %164 = vmatpush.msra.mxu2 %v475_v1  ;;  %v30_v5 = vld [vmem:[%s803_s0] sm:$0xff]  ;;  %v549_v11 = vld [vmem:[%s801_s2 + $0x30] sm:$0xff]  ;;  %v558_v12 = vld [vmem:[%s801_s2 + $0x28] sm:$0xff] }
   0x5   :  { %188 = vmatpush.msra.mxu3 %v475_v1  ;;  %385 = vmatmul.msk.f32.vlgmr.msra.gmra.mxu0 %vm43_vm1, %v30_v5  ;;  %v531_v9 = vld [vmem:[%s801_s2 + $0x40] sm:$0xff]  ;;  %v576_v14 = vld [vmem:[%s801_s2 + $0x18] sm:$0xff]  ;;  %v585_v15 = vld [vmem:[%s801_s2 + $0x10] sm:$0xff] }
   0x6   :  { %141 = vmatpush.msra.mxu1 %v482_v2  ;;  %165 = vmatpush.msra.mxu2 %v482_v2  ;;  %v567_v13 = vld [vmem:[%s801_s2 + $0x20] sm:$0xff]  ;;  %v594_v16 = vld [vmem:[%s801_s2 + $0x8] sm:$0xff]  ;;  %v32_v26 = vld [vmem:[%s803_s0 + $0x10] sm:$0xff] }
   0x7   :  { %189 = vmatpush.msra.mxu3 %v482_v2  ;;  %283 = vmatpush.msrb.mxu0 %v470_v0  ;;  %v603_v17 = vld [vmem:[%s801_s2] sm:$0xff]  ;;  %v31_v19 = vld [vmem:[%s803_s0 + $0x8] sm:$0xff]  ;;  %v33_v32 = vld [vmem:[%s803_s0 + $0x18] sm:$0xff] }
   0x8   :  { %142 = vmatpush.msra.mxu1 %v493_v4  ;;  %166 = vmatpush.msra.mxu2 %v493_v4  ;;  %v689_v20 = vld [vmem:[%s804_s3] ss:$0 sm:$0xff]  ;;  %v35_v44 = vld [vmem:[%s803_s0 + $0x28] sm:$0xff]  ;;  %v36_v50 = vld [vmem:[%s803_s0 + $0x30] sm:$0xff] }
   0x9   :  { %190 = vmatpush.msra.mxu3 %v493_v4  ;;  %284 = vmatpush.msrb.mxu0 %v475_v1  ;;  %v34_v38 = vld [vmem:[%s803_s0 + $0x20] sm:$0xff]  ;;  %v37_v51 = vld [vmem:[%s803_s0 + $0x38] sm:$0xff]  ;;  %v348_v58 = vld [vmem:[%s806_s4 + $0x70] sm:$0xff] }
   0xa   :  { %143 = vmatpush.msra.mxu1 %v504_v6  ;;  %167 = vmatpush.msra.mxu2 %v504_v6  ;;  %v349_v57 = vld [vmem:[%s806_s4 + $0x78] sm:$0xff]  ;;  %v347_v60 = vld [vmem:[%s806_s4 + $0x68] sm:$0xff]  ;;  %v346_v61 = vld [vmem:[%s806_s4 + $0x60] sm:$0xff] }
   0xb   :  { %191 = vmatpush.msra.mxu3 %v504_v6  ;;  %285 = vmatpush.msrb.mxu0 %v482_v2  ;;  %v345_v62 = vld [vmem:[%s806_s4 + $0x58] sm:$0xff]  ;;  %v344_v63 = vld [vmem:[%s806_s4 + $0x50] sm:$0xff] }
   0xc   :  { %144 = vmatpush.msra.mxu1 %v513_v7  ;;  %168 = vmatpush.msra.mxu2 %v513_v7 }
   0xd   :  { %192 = vmatpush.msra.mxu3 %v513_v7  ;;  %286 = vmatpush.msrb.mxu0 %v493_v4 }
   0xe   :  { %145 = vmatpush.msra.mxu1 %v522_v8  ;;  %169 = vmatpush.msra.mxu2 %v522_v8 }
   0xf   :  { %193 = vmatpush.msra.mxu3 %v522_v8  ;;  %287 = vmatpush.msrb.mxu0 %v504_v6 }
  0x10   :  { %146 = vmatpush.msra.mxu1 %v531_v9  ;;  %170 = vmatpush.msra.mxu2 %v531_v9 }
  0x11   :  { %194 = vmatpush.msra.mxu3 %v531_v9  ;;  %288 = vmatpush.msrb.mxu0 %v513_v7 }
  0x12   :  { %147 = vmatpush.msra.mxu1 %v540_v10  ;;  %171 = vmatpush.msra.mxu2 %v540_v10 }
  0x13   :  { %195 = vmatpush.msra.mxu3 %v540_v10  ;;  %289 = vmatpush.msrb.mxu0 %v522_v8 }
  0x14   :  { %148 = vmatpush.msra.mxu1 %v549_v11  ;;  %172 = vmatpush.msra.mxu2 %v549_v11 }
  0x15   :  { %196 = vmatpush.msra.mxu3 %v549_v11  ;;  %290 = vmatpush.msrb.mxu0 %v531_v9 }
  0x16   :  { %149 = vmatpush.msra.mxu1 %v558_v12  ;;  %173 = vmatpush.msra.mxu2 %v558_v12 }
  0x17   :  { %197 = vmatpush.msra.mxu3 %v558_v12  ;;  %291 = vmatpush.msrb.mxu0 %v540_v10 }
  0x18   :  { %150 = vmatpush.msra.mxu1 %v567_v13  ;;  %174 = vmatpush.msra.mxu2 %v567_v13 }
  0x19   :  { %198 = vmatpush.msra.mxu3 %v567_v13  ;;  %292 = vmatpush.msrb.mxu0 %v549_v11 }
  0x1a   :  { %151 = vmatpush.msra.mxu1 %v576_v14  ;;  %175 = vmatpush.msra.mxu2 %v576_v14 }
  0x1b   :  { %199 = vmatpush.msra.mxu3 %v576_v14  ;;  %293 = vmatpush.msrb.mxu0 %v558_v12 }
  0x1c   :  { %152 = vmatpush.msra.mxu1 %v585_v15  ;;  %176 = vmatpush.msra.mxu2 %v585_v15 }
  0x1d   :  { %200 = vmatpush.msra.mxu3 %v585_v15  ;;  %294 = vmatpush.msrb.mxu0 %v567_v13 }
  0x1e   :  { %153 = vmatpush.msra.mxu1 %v594_v16  ;;  %177 = vmatpush.msra.mxu2 %v594_v16 }
  0x1f   :  { %201 = vmatpush.msra.mxu3 %v594_v16  ;;  %295 = vmatpush.msrb.mxu0 %v576_v14 }
  0x20   :  { %154 = vmatpush.msra.mxu1 %v603_v17  ;;  %178 = vmatpush.msra.mxu2 %v603_v17 }
  0x21   :  { %155 = vmatmul.f32.vlgmr.msra.gmra.mxu1 %v426_v18  ;;  %202 = vmatpush.msra.mxu3 %v603_v17 }
  0x22   :  { %211 = vmatpush.msrb.mxu1 %v470_v0  ;;  %235 = vmatpush.msrb.mxu2 %v470_v0 }
  0x23   :  { %259 = vmatpush.msrb.mxu3 %v470_v0  ;;  %296 = vmatpush.msrb.mxu0 %v585_v15 }
  0x24   :  { %212 = vmatpush.msrb.mxu1 %v475_v1  ;;  %236 = vmatpush.msrb.mxu2 %v475_v1 }
  0x25   :  { %260 = vmatpush.msrb.mxu3 %v475_v1  ;;  %297 = vmatpush.msrb.mxu0 %v594_v16 }
  0x26   :  { %213 = vmatpush.msrb.mxu1 %v482_v2  ;;  %237 = vmatpush.msrb.mxu2 %v482_v2 }
  0x27   :  { %261 = vmatpush.msrb.mxu3 %v482_v2  ;;  %298 = vmatpush.msrb.mxu0 %v603_v17 }
  0x28   :  { %214 = vmatpush.msrb.mxu1 %v493_v4  ;;  %238 = vmatpush.msrb.mxu2 %v493_v4 }
  0x29   :  { %262 = vmatpush.msrb.mxu3 %v493_v4  ;;  %386 = vmatmul.msk.f32.gmra.mxu0 %vm43_vm1, %v31_v19  ;;  %v409_v19 = vld [vmem:[%s807_s5] ss:$0 sm:$0xff] }
  0x2a   :  { %215 = vmatpush.msrb.mxu1 %v504_v6  ;;  %239 = vmatpush.msrb.mxu2 %v504_v6 }
  0x2b   :  { %263 = vmatpush.msrb.mxu3 %v504_v6 }
  0x2c   :  { %216 = vmatpush.msrb.mxu1 %v513_v7  ;;  %240 = vmatpush.msrb.mxu2 %v513_v7 }
  0x2d   :  { %264 = vmatpush.msrb.mxu3 %v513_v7 }
  0x2e   :  { %217 = vmatpush.msrb.mxu1 %v522_v8  ;;  %241 = vmatpush.msrb.mxu2 %v522_v8 }
  0x2f   :  { %265 = vmatpush.msrb.mxu3 %v522_v8 }
  0x30   :  { %218 = vmatpush.msrb.mxu1 %v531_v9  ;;  %242 = vmatpush.msrb.mxu2 %v531_v9 }
  0x31   :  { %266 = vmatpush.msrb.mxu3 %v531_v9  ;;  %387 = vmatmul.msk.f32.gmra.mxu0 %vm43_vm1, %v32_v26 }
  0x32   :  { %219 = vmatpush.msrb.mxu1 %v540_v10  ;;  %243 = vmatpush.msrb.mxu2 %v540_v10 }
  0x33   :  { %267 = vmatpush.msrb.mxu3 %v540_v10 }
  0x34   :  { %220 = vmatpush.msrb.mxu1 %v549_v11  ;;  %244 = vmatpush.msrb.mxu2 %v549_v11 }
  0x35   :  { %268 = vmatpush.msrb.mxu3 %v549_v11 }
  0x36   :  { %221 = vmatpush.msrb.mxu1 %v558_v12  ;;  %245 = vmatpush.msrb.mxu2 %v558_v12 }
  0x37   :  { %269 = vmatpush.msrb.mxu3 %v558_v12 }
  0x38   :  { %222 = vmatpush.msrb.mxu1 %v567_v13  ;;  %246 = vmatpush.msrb.mxu2 %v567_v13 }
  0x39   :  { %270 = vmatpush.msrb.mxu3 %v567_v13  ;;  %388 = vmatmul.msk.f32.gmra.mxu0 %vm43_vm1, %v33_v32 }
  0x3a   :  { %223 = vmatpush.msrb.mxu1 %v576_v14  ;;  %247 = vmatpush.msrb.mxu2 %v576_v14 }
  0x3b   :  { %271 = vmatpush.msrb.mxu3 %v576_v14 }
  0x3c   :  { %224 = vmatpush.msrb.mxu1 %v585_v15  ;;  %248 = vmatpush.msrb.mxu2 %v585_v15 }
  0x3d   :  { %272 = vmatpush.msrb.mxu3 %v585_v15 }
  0x3e   :  { %225 = vmatpush.msrb.mxu1 %v594_v16  ;;  %249 = vmatpush.msrb.mxu2 %v594_v16 }
  0x3f   :  { %273 = vmatpush.msrb.mxu3 %v594_v16 }
  0x40   :  { %226 = vmatpush.msrb.mxu1 %v603_v17  ;;  %250 = vmatpush.msrb.mxu2 %v603_v17 }
  0x41   :  { %274 = vmatpush.msrb.mxu3 %v603_v17  ;;  %389 = vmatmul.msk.f32.gmra.mxu0 %vm43_vm1, %v34_v38 }
  0x42   :  { %307 = vmatpush.msra.mxu1 %v470_v0  ;;  %v343_v0 = vld [vmem:[%s806_s4 + $0x48] sm:$0xff] }
  0x44   :  { %308 = vmatpush.msra.mxu1 %v475_v1 }
  0x46   :  { %309 = vmatpush.msra.mxu1 %v482_v2 }
  0x48   :  { %310 = vmatpush.msra.mxu1 %v493_v4 }
  0x49   :  { %390 = vmatmul.msk.f32.gmra.mxu0 %vm43_vm1, %v35_v44 }
  0x4a   :  { %311 = vmatpush.msra.mxu1 %v504_v6  ;;  %v342_v6 = vld [vmem:[%s806_s4 + $0x40] sm:$0xff] }
  0x4c   :  { %312 = vmatpush.msra.mxu1 %v513_v7  ;;  %v341_v7 = vld [vmem:[%s806_s4 + $0x38] sm:$0xff] }
  0x4e   :  { %313 = vmatpush.msra.mxu1 %v522_v8  ;;  %v340_v8 = vld [vmem:[%s806_s4 + $0x30] sm:$0xff] }
  0x50   :  { %314 = vmatpush.msra.mxu1 %v531_v9  ;;  %v339_v9 = vld [vmem:[%s806_s4 + $0x28] sm:$0xff] }
  0x51   :  { %391 = vmatmul.msk.f32.gmra.mxu0 %vm43_vm1, %v36_v50 }
  0x52   :  { %315 = vmatpush.msra.mxu1 %v540_v10  ;;  %v338_v10 = vld [vmem:[%s806_s4 + $0x20] sm:$0xff] }
  0x54   :  { %316 = vmatpush.msra.mxu1 %v549_v11  ;;  %v337_v11 = vld [vmem:[%s806_s4 + $0x18] sm:$0xff] }
  0x56   :  { %317 = vmatpush.msra.mxu1 %v558_v12  ;;  %v336_v12 = vld [vmem:[%s806_s4 + $0x10] sm:$0xff] }
  0x58   :  { %318 = vmatpush.msra.mxu1 %v567_v13  ;;  %v335_v13 = vld [vmem:[%s806_s4 + $0x8] sm:$0xff] }
  0x59   :  { %392 = vmatmul.msk.f32.gmra.mxu0 %vm43_vm1, %v37_v51 }
  0x5a   :  { %319 = vmatpush.msra.mxu1 %v576_v14  ;;  %v334_v14 = vld [vmem:[%s806_s4] sm:$0xff] }
  0x5c   :  { %320 = vmatpush.msra.mxu1 %v585_v15 }
  0x5e   :  { %321 = vmatpush.msra.mxu1 %v594_v16 }
  0x60   :  { %322 = vmatpush.msra.mxu1 %v603_v17 }
  0x82   :  { %v89_v21 = vpop.f32.mrf.mxu0 }
  0x83   :  { %v90_v22 = vadd.f32 %v689_v20, %v89_v21 }
  0x9e   :  { %v156_v23 = vpop.f32.mrf.mxu1 }
  0x9f   :  { %v157_v24 = vadd.f32 %v156_v23, %v90_v22 }
  0xa1   :  { %410 = vtanh.f32 %v157_v24 }
  0xa6   :  { %v92_v27 = vpop.f32.mrf.mxu0 }
  0xa7   :  { %v411_v25 = vpop.eup %410  ;;  %v93_v28 = vadd.f32 %v689_v20, %v92_v27 }
  0xa8   :  { %160 = vst [vmem:[%s805_s6] sm:$0xff] %v411_v25  ;;  %179 = vmatmul.f32.vlgmr.msra.gmra.mxu2 %v411_v25 }
  0xa9   :  { %354 = vmatpush.msra.mxu2 %v349_v57 }
  0xab   :  { %355 = vmatpush.msra.mxu2 %v348_v58 }
  0xad   :  { %356 = vmatpush.msra.mxu2 %v347_v60 }
  0xae   :  { %v95_v33 = vpop.f32.mrf.mxu0 }
  0xaf   :  { %v96_v34 = vadd.f32 %v689_v20, %v95_v33  ;;  %357 = vmatpush.msra.mxu2 %v346_v61 }
  0xb1   :  { %358 = vmatpush.msra.mxu2 %v345_v62 }
  0xb3   :  { %359 = vmatpush.msra.mxu2 %v344_v63 }
  0xb5   :  { %360 = vmatpush.msra.mxu2 %v343_v0 }
  0xb6   :  { %v98_v39 = vpop.f32.mrf.mxu0 }
  0xb7   :  { %v99_v40 = vadd.f32 %v689_v20, %v98_v39  ;;  %361 = vmatpush.msra.mxu2 %v342_v6 }
  0xb9   :  { %362 = vmatpush.msra.mxu2 %v341_v7 }
  0xbb   :  { %363 = vmatpush.msra.mxu2 %v340_v8 }
  0xbd   :  { %364 = vmatpush.msra.mxu2 %v339_v9 }
  0xbe   :  { %v101_v45 = vpop.f32.mrf.mxu0 }
  0xbf   :  { %v102_v46 = vadd.f32 %v689_v20, %v101_v45  ;;  %365 = vmatpush.msra.mxu2 %v338_v10 }
  0xc1   :  { %366 = vmatpush.msra.mxu2 %v337_v11 }
  0xc3   :  { %367 = vmatpush.msra.mxu2 %v336_v12 }
  0xc5   :  { %368 = vmatpush.msra.mxu2 %v335_v13 }
  0xc6   :  { %v104_v52 = vpop.f32.mrf.mxu0 }
  0xc7   :  { %v105_v53 = vadd.f32 %v689_v20, %v104_v52  ;;  %369 = vmatpush.msra.mxu2 %v334_v14 }
  0xce   :  { %v107_v59 = vpop.f32.mrf.mxu0 }
  0xcf   :  { %v108_v2 = vadd.f32 %v689_v20, %v107_v59 }
  0xd6   :  { %v110_v1 = vpop.f32.mrf.mxu0 }
  0xd7   :  { %v111_v15 = vadd.f32 %v689_v20, %v110_v1 }
 0x12b   :  { %v180_v29 = vpop.f32.mrf.mxu2 }
 0x12c   :  { %v181_v30 = vadd.f32 %v180_v29, %v93_v28 }
 0x12e   :  { %412 = vtanh.f32 %v181_v30 }
 0x134   :  { %v413_v31 = vpop.eup %412 }
 0x135   :  { %394 = vst [vmem:[%s805_s6 + $0x8] sm:$0xff] %v413_v31  ;;  %203 = vmatmul.f32.vlgmr.msra.gmra.mxu3 %v413_v31 }
 0x1b8   :  { %v204_v35 = vpop.f32.mrf.mxu3 }
 0x1b9   :  { %v205_v36 = vadd.f32 %v204_v35, %v96_v34 }
 0x1bb   :  { %414 = vtanh.f32 %v205_v36 }
 0x1c1   :  { %v415_v37 = vpop.eup %414 }
 0x1c2   :  { %396 = vst [vmem:[%s805_s6 + $0x10] sm:$0xff] %v415_v37  ;;  %227 = vmatmul.f32.vlgmr.msrb.gmra.mxu1 %v415_v37 }
 0x23f   :  { %v228_v41 = vpop.f32.mrf.mxu1 }
 0x240   :  { %v229_v42 = vadd.f32 %v228_v41, %v99_v40 }
 0x242   :  { %416 = vtanh.f32 %v229_v42 }
 0x248   :  { %v417_v43 = vpop.eup %416 }
 0x249   :  { %398 = vst [vmem:[%s805_s6 + $0x18] sm:$0xff] %v417_v43  ;;  %251 = vmatmul.f32.vlgmr.msrb.gmra.mxu2 %v417_v43 }
 0x2cc   :  { %v252_v47 = vpop.f32.mrf.mxu2 }
 0x2cd   :  { %v253_v48 = vadd.f32 %v252_v47, %v102_v46 }
 0x2cf   :  { %418 = vtanh.f32 %v253_v48 }
 0x2d5   :  { %v419_v49 = vpop.eup %418 }
 0x2d6   :  { %400 = vst [vmem:[%s805_s6 + $0x20] sm:$0xff] %v419_v49  ;;  %275 = vmatmul.f32.vlgmr.msrb.gmra.mxu3 %v419_v49 }
 0x359   :  { %v276_v54 = vpop.f32.mrf.mxu3 }
 0x35a   :  { %v277_v55 = vadd.f32 %v276_v54, %v105_v53 }
 0x35c   :  { %420 = vtanh.f32 %v277_v55 }
 0x362   :  { %v421_v56 = vpop.eup %420 }
 0x363   :  { %402 = vst [vmem:[%s805_s6 + $0x28] sm:$0xff] %v421_v56  ;;  %299 = vmatmul.f32.vlgmr.msrb.gmra.mxu0 %v421_v56 }
 0x3e0   :  { %v300_v3 = vpop.f32.mrf.mxu0 }
 0x3e1   :  { %v301_v4 = vadd.f32 %v300_v3, %v108_v2 }
 0x3e3   :  { %422 = vtanh.f32 %v301_v4 }
 0x3e9   :  { %v423_v5 = vpop.eup %422 }
 0x3ea   :  { %404 = vst [vmem:[%s805_s6 + $0x30] sm:$0xff] %v423_v5  ;;  %323 = vmatmul.f32.vlgmr.msra.gmra.mxu1 %v423_v5 }
 0x467   :  { %v324_v16 = vpop.f32.mrf.mxu1 }
 0x468   :  { %v325_v17 = vadd.f32 %v324_v16, %v111_v15 }
 0x46a   :  { %424 = vtanh.f32 %v325_v17 }
 0x470   :  { %v425_v18 = vpop.eup %424 }
 0x471   :  { %406 = vst [vmem:[%s805_s6 + $0x38] sm:$0xff] %v425_v18  ;;  %370 = vmatmul.f32.vlgmr.msra.gmra.mxu2 %v425_v18 }
 0x4f4   :  { %v371_v21 = vpop.f32.mrf.mxu2 }
 0x4f5   :  { %v372_v22 = vadd.f32 %v409_v19, %v371_v21 }
 0x4f7   :  { %375 = vst.msk [vmem:[%s808_s7] sm:$0xff] %vm374_vm2, %v372_v22 }

</bundles_post_ra>
